<compile_context>
chip_gen: v6e
topology: v6e:2x2x1
jax: 0.10.0
libtpu: 0.0.40
codegen_flags: <defaults>
</compile_context>

<pallas_src>
import functools

import jax
import jax.numpy as jnp
from jax.experimental import pallas as pl
from jax.experimental.pallas import tpu as pltpu


def ffnorm_kernel(x_ref, w1_ref, b1_ref, w2_ref, b2_ref, o_ref, *, matmul_dtype):
    # One grid step == one batch element's (S, E) slab.
    x = x_ref[0]                                       # (S, E), f32

    # ---- fused feed-forward: Linear(E->H) -> ReLU -> Linear(H->E) + residual ----
    # Only the dot operands are cast (matmul_dtype); accumulation and all
    # elementwise / norm math stay f32.
    h = jnp.dot(x.astype(matmul_dtype), w1_ref[...].astype(matmul_dtype),
                preferred_element_type=jnp.float32) + b1_ref[...]
    h = jnp.maximum(h, 0.0)
    y = jnp.dot(h.astype(matmul_dtype), w2_ref[...].astype(matmul_dtype),
                preferred_element_type=jnp.float32) + b2_ref[...]
    y = y + x                                          # residual, (S, E) f32

    # ---- per-batch "layer" norm over the whole (S, E) slab ----
    S, E = y.shape
    n = S * E
    mean = jnp.sum(y) * (1.0 / n)
    c = y - mean
    # Unbiased variance (Bessel's n-1) — matches torch.var's default.
    var = jnp.sum(c * c) * (1.0 / (n - 1))
    o_ref[0] = (c * jax.lax.rsqrt(var + 1e-5)).astype(o_ref.dtype)


def ff_and_norm_sublayer(x, w1, b1, w2, b2, matmul_dtype=None):
    """x: (B, S, E); w1: (E, H); b1: (1, H); w2: (H, E); b2: (1, E)."""
    B, S, E = x.shape
    H = w1.shape[1]

    if matmul_dtype is None:
        # At real sizes, bf16 operands get full MXU throughput on v6e/v7x (and a
        # matmul win on v5e too). At toy sizes keep f32 for exactness vs the
        # f32 reference.
        matmul_dtype = jnp.bfloat16 if max(E, H) >= 256 else jnp.float32

    cost = pl.CostEstimate(
        flops=4 * B * S * E * H + 6 * B * S * E,        # two GEMMs + residual/norm elementwise
        transcendentals=B,                              # one rsqrt per batch slab
        bytes_accessed=4 * (2 * B * S * E + 2 * E * H + H + E),
    )

    out = pl.pallas_call(
        functools.partial(ffnorm_kernel, matmul_dtype=matmul_dtype),
        out_shape=jax.ShapeDtypeStruct((B, S, E), x.dtype),
        grid=(B,),
        in_specs=[
            pl.BlockSpec((1, S, E), lambda b: (b, 0, 0)),   # per-batch slab
            pl.BlockSpec((E, H), lambda b: (0, 0)),         # weights pinned in VMEM
            pl.BlockSpec((1, H), lambda b: (0, 0)),
            pl.BlockSpec((H, E), lambda b: (0, 0)),
            pl.BlockSpec((1, E), lambda b: (0, 0)),
        ],
        out_specs=pl.BlockSpec((1, S, E), lambda b: (b, 0, 0)),
        compiler_params=pltpu.CompilerParams(
            dimension_semantics=("parallel",),              # batch axis splits across TCs on v7x
        ),
        input_output_aliases={0: 0},                        # output reuses x's HBM buffer
        cost_estimate=cost,
    )(x, w1, b1, w2, b2)
    return out


def reference(x, w1, b1, w2, b2):
    h = jnp.maximum(jnp.einsum("bse,eh->bsh", x, w1) + b1[0], 0.0)
    y = jnp.einsum("bsh,he->bse", h, w2) + b2[0] + x
    mean = jnp.mean(y, axis=(1, 2), keepdims=True)
    centered = y - mean
    n = y.shape[1] * y.shape[2]
    var = jnp.sum(centered * centered, axis=(1, 2), keepdims=True) / (n - 1)
    return centered / jnp.sqrt(var + 1e-5)


if __name__ == "__main__":
    # embed_dim=32, feed_forward_hidden=64, batch=2, seq=8 (n_heads unused in forward).
    B, S, E, H = 2, 8, 32, 64

    key = jax.random.PRNGKey(0)
    kx, k1, k2, k3, k4 = jax.random.split(key, 5)

    x = jax.random.normal(kx, (B, S, E), dtype=jnp.float32)
    w1 = jax.random.uniform(k1, (E, H), jnp.float32, -1.0, 1.0) / jnp.sqrt(E)
    b1 = jax.random.uniform(k2, (1, H), jnp.float32, -1.0, 1.0) / jnp.sqrt(E)
    w2 = jax.random.uniform(k3, (H, E), jnp.float32, -1.0, 1.0) / jnp.sqrt(H)
    b2 = jax.random.uniform(k4, (1, E), jnp.float32, -1.0, 1.0) / jnp.sqrt(H)

    out = jax.block_until_ready(ff_and_norm_sublayer(x, w1, b1, w2, b2))
    ref = reference(x, w1, b1, w2, b2)
    assert out.shape == (B, S, E)
    assert jnp.allclose(out, ref, atol=1e-4, rtol=1e-4), "mismatch vs JAX reference"

    print("KERNEL_OK")
</pallas_src>

<mosaic_0001>
module attributes {stable_mosaic.version = 11 : i64} {
  func.func @ffnorm_kernel(%arg0: i32, %arg1: memref<1x8x32xf32, #tpu.memory_space<vmem>>, %arg2: memref<32x64xf32, #tpu.memory_space<vmem>>, %arg3: memref<1x64xf32, #tpu.memory_space<vmem>>, %arg4: memref<64x32xf32, #tpu.memory_space<vmem>>, %arg5: memref<1x32xf32, #tpu.memory_space<vmem>>, %arg6: memref<1x8x32xf32, #tpu.memory_space<vmem>>) attributes {dimension_semantics = [#tpu.dimension_semantics<parallel>], iteration_bounds = array<i64: 2>, scalar_prefetch = 0 : i64, scratch_operands = 0 : i64, tpu.core_type = #tpu.core_type<tc>, window_params = [{transform_indices = @transform_0, window_bounds = array<i64: 1, 8, 32>}, {pipeline_mode = #tpu.pipeline_mode<synchronous>, transform_indices = @transform_1, window_bounds = array<i64: 32, 64>}, {pipeline_mode = #tpu.pipeline_mode<synchronous>, transform_indices = @transform_2, window_bounds = array<i64: 1, 64>}, {pipeline_mode = #tpu.pipeline_mode<synchronous>, transform_indices = @transform_3, window_bounds = array<i64: 64, 32>}, {pipeline_mode = #tpu.pipeline_mode<synchronous>, transform_indices = @transform_4, window_bounds = array<i64: 1, 32>}, {transform_indices = @transform_5, window_bounds = array<i64: 1, 8, 32>}]} {
    %c0 = arith.constant 0 : index
    %c0_0 = arith.constant 0 : index
    %c0_1 = arith.constant 0 : index
    %0 = vector.load %arg1[%c0, %c0_0, %c0_1] : memref<1x8x32xf32, #tpu.memory_space<vmem>>, vector<1x8x32xf32>
    %1 = vector.shape_cast %0 : vector<1x8x32xf32> to vector<8x32xf32>
    %c0_2 = arith.constant 0 : index
    %c0_3 = arith.constant 0 : index
    %2 = vector.load %arg2[%c0_2, %c0_3] : memref<32x64xf32, #tpu.memory_space<vmem>>, vector<32x64xf32>
    %cst = arith.constant dense<0.000000e+00> : vector<8x64xf32>
    %3 = tpu.matmul %1, %2, %cst {dimension_numbers = #tpu.dot_dimension_numbers<[1], [0], [0], [1], [0, 0, 1, 1], [], []>} : vector<8x32xf32>, vector<32x64xf32>, vector<8x64xf32> -> vector<8x64xf32>
    %c0_4 = arith.constant 0 : index
    %c0_5 = arith.constant 0 : index
    %4 = vector.load %arg3[%c0_4, %c0_5] : memref<1x64xf32, #tpu.memory_space<vmem>>, vector<1x64xf32>
    %5 = vector.broadcast %4 : vector<1x64xf32> to vector<8x64xf32>
    %6 = arith.addf %3, %5 : vector<8x64xf32>
    %cst_6 = arith.constant 0.000000e+00 : f32
    %7 = vector.broadcast %cst_6 : f32 to vector<8x64xf32>
    %8 = arith.maximumf %6, %7 : vector<8x64xf32>
    %c0_7 = arith.constant 0 : index
    %c0_8 = arith.constant 0 : index
    %9 = vector.load %arg4[%c0_7, %c0_8] : memref<64x32xf32, #tpu.memory_space<vmem>>, vector<64x32xf32>
    %cst_9 = arith.constant dense<0.000000e+00> : vector<8x32xf32>
    %10 = tpu.matmul %8, %9, %cst_9 {dimension_numbers = #tpu.dot_dimension_numbers<[1], [0], [0], [1], [0, 0, 1, 1], [], []>} : vector<8x64xf32>, vector<64x32xf32>, vector<8x32xf32> -> vector<8x32xf32>
    %c0_10 = arith.constant 0 : index
    %c0_11 = arith.constant 0 : index
    %11 = vector.load %arg5[%c0_10, %c0_11] : memref<1x32xf32, #tpu.memory_space<vmem>>, vector<1x32xf32>
    %12 = vector.broadcast %11 : vector<1x32xf32> to vector<8x32xf32>
    %13 = arith.addf %10, %12 : vector<8x32xf32>
    %14 = arith.addf %13, %1 : vector<8x32xf32>
    %15 = vector.shape_cast %14 : vector<8x32xf32> to vector<1x8x32xf32>
    %cst_12 = arith.constant dense<0.000000e+00> : vector<1xf32>
    %16 = vector.multi_reduction <add>, %15, %cst_12 [1, 2] : vector<1x8x32xf32> to vector<1xf32>
    %17 = vector.shape_cast %16 : vector<1xf32> to vector<1x1x1xf32>
    %18 = vector.extract %17[0, 0, 0] : f32 from vector<1x1x1xf32>
    %cst_13 = arith.constant 3.906250e-03 : f32
    %19 = arith.mulf %18, %cst_13 : f32
    %20 = vector.broadcast %19 : f32 to vector<8x32xf32>
    %21 = arith.subf %14, %20 : vector<8x32xf32>
    %22 = arith.mulf %21, %21 : vector<8x32xf32>
    %23 = vector.shape_cast %22 : vector<8x32xf32> to vector<1x8x32xf32>
    %cst_14 = arith.constant dense<0.000000e+00> : vector<1xf32>
    %24 = vector.multi_reduction <add>, %23, %cst_14 [1, 2] : vector<1x8x32xf32> to vector<1xf32>
    %25 = vector.shape_cast %24 : vector<1xf32> to vector<1x1x1xf32>
    %26 = vector.extract %25[0, 0, 0] : f32 from vector<1x1x1xf32>
    %cst_15 = arith.constant 0.00392156886 : f32
    %27 = arith.mulf %26, %cst_15 : f32
    %cst_16 = arith.constant 9.99999974E-6 : f32
    %28 = arith.addf %27, %cst_16 : f32
    %29 = math.rsqrt %28 : f32
    %30 = vector.broadcast %29 : f32 to vector<8x32xf32>
    %31 = arith.mulf %21, %30 : vector<8x32xf32>
    %c0_17 = arith.constant 0 : index
    %c0_18 = arith.constant 0 : index
    %c0_19 = arith.constant 0 : index
    %32 = vector.load %arg6[%c0_17, %c0_18, %c0_19] : memref<1x8x32xf32, #tpu.memory_space<vmem>>, vector<1x8x32xf32>
    %33 = vector.shape_cast %32 : vector<1x8x32xf32> to vector<8x32xf32>
    %34 = vector.shape_cast %31 : vector<8x32xf32> to vector<1x8x32xf32>
    tpu.vector_store %arg6[%c0_17, %c0_18, %c0_19], %34 {strides = array<i32>} : memref<1x8x32xf32, #tpu.memory_space<vmem>>, vector<1x8x32xf32>,
    return
  }
  func.func @transform_0(%arg0: i32) -> (i32, i32, i32) {
    %c0_i32 = arith.constant 0 : i32
    %c0_i32_0 = arith.constant 0 : i32
    %c0_i32_1 = arith.constant 0 : i32
    return %arg0, %c0_i32, %c0_i32_0 : i32, i32, i32
  }
  func.func @transform_1(%arg0: i32) -> (i32, i32) {
    %c0_i32 = arith.constant 0 : i32
    %c0_i32_0 = arith.constant 0 : i32
    %c0_i32_1 = arith.constant 0 : i32
    return %c0_i32, %c0_i32_0 : i32, i32
  }
  func.func @transform_2(%arg0: i32) -> (i32, i32) {
    %c0_i32 = arith.constant 0 : i32
    %c0_i32_0 = arith.constant 0 : i32
    %c0_i32_1 = arith.constant 0 : i32
    return %c0_i32, %c0_i32_0 : i32, i32
  }
  func.func @transform_3(%arg0: i32) -> (i32, i32) {
    %c0_i32 = arith.constant 0 : i32
    %c0_i32_0 = arith.constant 0 : i32
    %c0_i32_1 = arith.constant 0 : i32
    return %c0_i32, %c0_i32_0 : i32, i32
  }
  func.func @transform_4(%arg0: i32) -> (i32, i32) {
    %c0_i32 = arith.constant 0 : i32
    %c0_i32_0 = arith.constant 0 : i32
    %c0_i32_1 = arith.constant 0 : i32
    return %c0_i32, %c0_i32_0 : i32, i32
  }
  func.func @transform_5(%arg0: i32) -> (i32, i32, i32) {
    %c0_i32 = arith.constant 0 : i32
    %c0_i32_0 = arith.constant 0 : i32
    %c0_i32_1 = arith.constant 0 : i32
    return %arg0, %c0_i32, %c0_i32_0 : i32, i32, i32
  }
}

</mosaic_0001>

<bundles_post_ra>
// kernel: tpu_custom_call.1
= control target key start
LH: loop header
LB: loop body
LE: loop exit
PB: predicated region body
PF: predicated region fallthrough
CT: control target
= control target key end

     0   :  { %10 = vsyncpa [#allocation3], 0  ;;  %s968_s0 = inlined_call_operand.hbm [shape: f32[2,8,32], index: 0, kind: input, shape index: {}, may-alias: {0,5}]   ;;  %s969_s1 = inlined_call_operand.vmem [shape: f32[32,64], index: 1, kind: input, shape index: {}]   ;;  %s970_s2 = inlined_call_operand.vmem [shape: f32[1,64], index: 2, kind: input, shape index: {}]   ;;  %s971_s3 = inlined_call_operand.vmem [shape: f32[64,32], index: 3, kind: input, shape index: {}]   ;;  %s972_s4 = inlined_call_operand.vmem [shape: f32[1,32], index: 4, kind: input, shape index: {}]   ;;  %s973_s5 = inlined_call_operand.hbm [shape: f32[2,8,32], index: 5, kind: output, shape index: {}, may-alias: {0,5}]  }
   0x1   :  { %12 = vsyncpa [#allocation3 + $0x1], 0 }
   0x2   :  { %13 = vsyncpa [#allocation4], 0 }
   0x3   :  { %15 = vsyncpa [#allocation4 + $0x1], 0  ;;  %s777_s18 = smov 0   ;;  %s779_s19 = smov 0  }
   0x4   :  { %s781_s20 = smov 0   ;;  %s783_s21 = smov 0  }
   0x5 LB: > { %s798_s22 = sadd.s32 4294967295, %s741_s21   ;;  %s533_s23 = sadd.s32 4294967294, %s741_s21   ;;  %s741_s21 = sphi %s783_s21, %s990_s21   ;;  %s737_s20 = sphi %s781_s20, %s989_s20   ;;  %s733_s19 = sphi %s779_s19, %s988_s19   ;;  %s729_s18 = sphi %s777_s18, %s987_s18  }
   0x6   : > { %s802_s24 = sadd.s32 1, %s741_s21   ;;  %s28_s25 = sadd.s32 1, %s737_s20 }
   0x7   : > { %s25_s26 = ssub.s32 %s741_s21, %s802_s24  ;;  %p35_p0 = scmp.ne.s32.totalorder %s737_s20, %s733_s19 }
   0x8   : > { %p26_p1 = scmp.eq.s32.totalorder %s25_s26, 0  ;;  %p36_p2 = scmp.eq.s32.totalorder %s741_s21, 0 }
   0x9   : > { %p41_p3 = scmp.ne.s32.totalorder %s733_s19, %s729_s18  ;;  %p42_p4 = scmp.eq.s32.totalorder %s798_s22, 0 }
   0xa   : > { %s814_s27 = scalar_select %p26_p1, %s737_s20, %s28_s25  }
   0xb   : > { %p816_p5 = por %p36_p2, %p35_p0  ;;  %p820_p6 = por %p42_p4, %p41_p3 }
   0xc   : > { %p149_p7 = scmp.eq.s32.totalorder %s798_s22, 1  ;;  %p155_p8 = scmp.eq.s32.totalorder %s533_s23, 1 }
   0xd   : > { %s977_s29 = scalar_select %p820_p6, 1, 0 }
   0xe   : > { %p611_p10 = scmp.lt.s32.totalorder %s741_s21, 2  ;;  %p827_p11 = por %p149_p7, %p35_p0 }
   0xf   : > { %p831_p12 = por %p155_p8, %p41_p3  ;;  %s187_s7 = sand.u32 1, %s737_s20  }
  0x10   : > { %s978_s30 = scalar_select %p827_p11, 1, 0 }
  0x11   : > { %s979_s6 = scalar_select %p831_p12, 1, 0 }
  0x12   : > { %s537_s8 = sshll.u32 %s741_s21, 7  ;;  %s536_s9 = sshll.u32 %s187_s7, 3 }
  0x13   : > { %s840_s12 = scalar_lea.hbm %s968_s0, %s537_s8  ;;  %s191_s13 = scalar_lea.vmem [#allocation2], %s536_s9 }
  0x14   : > { %s198_s14 = sshll.u32 %s191_s13, 4  ;;  %p844_p13 = pnand %p611_p10, %p816_p5  ;;  %s848_s14 = int_to_ptr.vmem [resolvable:$true] %s198_s14 }
  0x15   : > { %s188_s16 = scalar_lea.sflag [#allocation3], %s187_s7  ;;  %s649_s17 = scalar_lea.hbm %s840_s12, 128 }
  0x16   : > { %p650_p2 = scmp.ne.s32.totalorder %s840_s12, %s649_s17  ;;  %p651_p3 = pneg %p844_p13 }
  0x17   : > { %s654_s26 = scalar_lea.hbm %s968_s0, 256  ;;  %p655_p5 = scmp.lt.s32.totalorder %s840_s12, %s968_s0 }
  0x18   : > { %p652_p4 = pnand %p651_p3, %p650_p2  ;;  %p656_p8 = scmp.lt.s32.totalorder %s654_s26, %s649_s17 }
  0x1a   : > { %p653_p7 = pneg %p652_p4  ;;  %p657_p10 = por %p656_p8, %p655_p5 }
  0x1c   : > { %p658_p9 = pnand %p657_p10, %p653_p7 }
  0x1e   : > { %661 = shalt.err (!%p658_p9)
}
  0x1f   : > { %s662_s7 = scalar_lea.vmem %s848_s14, 128  ;;  %s743_s9 = smov [#allocation2]  }
  0x20   : > { %p663_p0 = scmp.ne.s32.totalorder %s848_s14, %s662_s7  ;;  %s667_s10 = sshll.u32 %s743_s9, 4  ;;  %s668_s10 = int_to_ptr.vmem [resolvable:$false] %s667_s10 }
  0x21   : > { %s669_s11 = scalar_lea.vmem %s668_s10, 256  ;;  %p670_p4 = scmp.lt.s32.totalorder %s848_s14, %s668_s10 }
  0x22   : > { %p665_p1 = pnand %p663_p0, %p651_p3  ;;  %p671_p12 = scmp.lt.s32.totalorder %s669_s11, %s662_s7 }
  0x24   : > { %p666_p2 = pneg %p665_p1  ;;  %p672_p11 = por %p671_p12, %p670_p4 }
  0x26   : > { %p673_p6 = pnand %p672_p11, %p666_p2 }
  0x28   : > { %676 = shalt.err (!%p673_p6)
}
  0x29   : > { %606 = dma.hbm_to_vmem [thread:$0]  (!%p844_p13), %s840_s12, 128, %s848_s14, %s188_s16  }
  0x2a   : > { %p981_p9 = scmp.lt.s32.totalorder %s741_s21, 3  ;;  %p982_p7 = scmp.ge.s32.totalorder %s741_s21, 1 }
  0x2c   : > { %p204_p0 = pnand %p982_p7, %p981_p9 }
  0x2d   : > { %s875_s13 = sand.u32 (!%p204_p0), 1, %s733_s19   ;;  %p983_p6 = scmp.ne.s32.totalorder (!%p204_p0), %s977_s29, 0 }
  0x2e   : > { %207 = sbr.rel (%p204_p0) target bundleno = 950 (0x3b6), region = 40  ;;  %s539_s17 = sshll.u32 (!%p204_p0), %s875_s13, 3 }
  0x2f   : > { %s210_s23 = scalar_lea.sflag (!%p204_p0), [#allocation3], %s875_s13  ;;  %s213_s15 = scalar_lea.vmem (!%p204_p0), [#allocation2], %s539_s17 }
  0x33   : > { %720 = dma.done.wait (%p983_p6), %s210_s23, 128  }
  0x34   : > { %722 = vsyncadd (%p983_p6), %s210_s23, 4294967168  ;;  %v744_v0 = vmov 0.0   ;;  %vm745_vm0 = vmmov 0   ;;  %v244_v1 = vld [vmem:[%s969_s1 + $0x18] sm:$0xff]  ;;  %v243_v2 = vld [vmem:[%s969_s1 + $0x10] sm:$0xff]  ;;  %vm252_vm1 = vcmask 261120  }
  0x35   : > { %563 = vmatprep.subr.mxu0 %v744_v0  ;;  %571 = vmatprep.mubr.msk.f32.mxu0 %vm745_vm0, %v744_v0  ;;  %v334_v3 = vld [vmem:[%s971_s3 + $0x38] sm:$0xff]  ;;  %v242_v4 = vld [vmem:[%s969_s1 + $0x8] sm:$0xff]  ;;  %v333_v5 = vld [vmem:[%s971_s3 + $0x30] sm:$0xff]  ;;  %vm342_vm2 = vcmask 523264   ;;  %s546_s28 = sshll.u32 %s798_s22, 7  ;;  %s239_s29 = scalar_lea.vmem [#allocation5], %s539_s17 }
  0x36   : > { %574 = vmatprep.subr.mxu1 %v744_v0  ;;  %590 = vmatprep.mubr.msk.f32.mxu1 %vm745_vm0, %v744_v0  ;;  %v332_v6 = vld [vmem:[%s971_s3 + $0x28] sm:$0xff]  ;;  %v241_v7 = vld [vmem:[%s969_s1] sm:$0xff]  ;;  %v330_v10 = vld [vmem:[%s971_s3 + $0x18] sm:$0xff]  ;;  %s463_s8 = sshll.u32 %s239_s29, 4  ;;  %s461_s11 = scalar_lea.hbm %s973_s5, %s546_s28  ;;  %s464_s8 = int_to_ptr.vmem [resolvable:$true] %s463_s8 }
  0x37   : > { %564 = vmatpush3.msra.mxu0 %v244_v1  ;;  %575 = vmatpush3.msra.mxu1 %v334_v3  ;;  %v240_v8 = vld [vmem:[%s213_s15] sm:$0xff]  ;;  %v329_v11 = vld [vmem:[%s971_s3 + $0x10] sm:$0xff]  ;;  %s450_s23 = scalar_lea.sflag [#allocation4], %s875_s13  ;;  %s677_s12 = scalar_lea.vmem %s464_s8, 128 }
  0x38   : > { %565 = vmatprep.subr.mxu0 %v744_v0  ;;  %576 = vmatprep.subr.mxu1 %v744_v0  ;;  %v331_v9 = vld [vmem:[%s971_s3 + $0x20] sm:$0xff]  ;;  %v328_v12 = vld [vmem:[%s971_s3 + $0x8] sm:$0xff]  ;;  %p678_p11 = scmp.ne.s32.totalorder %s464_s8, %s677_s12  ;;  %p984_p12 = scmp.ne.s32.totalorder %s978_s30, 0 }
  0x39   : > { %566 = vmatpush3.msra.mxu0 %v243_v2  ;;  %577 = vmatpush3.msra.mxu1 %v333_v5  ;;  %v327_v13 = vld [vmem:[%s971_s3] sm:$0xff]  ;;  %s746_s22 = smov [#allocation5]  }
  0x3a   : > { %567 = vmatprep.subr.mxu0 %v744_v0  ;;  %578 = vmatprep.subr.mxu1 %v744_v0  ;;  %v541_v14 = vld [vmem:[%s970_s2] ss:$0 sm:$0xff]  ;;  %p679_p13 = pnand %p678_p11, %p984_p12 }
  0x3b   : > { %568 = vmatpush3.msra.mxu0 %v242_v4  ;;  %579 = vmatpush3.msra.mxu1 %v332_v6  ;;  %v543_v19 = vld [vmem:[%s972_s4] ss:$0 sm:$0xff] }
  0x3c   : > { %569 = vmatprep.subr.mxu0 %v744_v0  ;;  %580 = vmatprep.subr.mxu1 %v744_v0  ;;  %p680_p1 = pneg %p679_p13 }
  0x3d   : > { %570 = vmatpush3.msra.mxu0 %v241_v7  ;;  %581 = vmatpush3.msra.mxu1 %v331_v9 }
  0x3e   : > { %572 = vmatmul.mubr.msk.f32.vlgmr.msra.gmra.mxu0 %vm252_vm1, %v240_v8  ;;  %582 = vmatprep.subr.mxu1 %v744_v0 }
  0x3f   : > { %583 = vmatpush3.msra.mxu1 %v330_v10 }
  0x40   : > { %584 = vmatprep.subr.mxu1 %v744_v0 }
  0x41   : > { %585 = vmatpush3.msra.mxu1 %v329_v11 }
  0x42   : > { %586 = vmatprep.subr.mxu1 %v744_v0 }
  0x43   : > { %587 = vmatpush3.msra.mxu1 %v328_v12 }
  0x44   : > { %588 = vmatprep.subr.mxu1 %v744_v0 }
  0x45   : > { %589 = vmatpush3.msra.mxu1 %v327_v13 }
  0xfe   : > { %v322_v15 = vpop.f32.mrf.mxu0 }
  0xff   : > { %v323_v16 = vadd.f32 %v541_v14, %v322_v15 }
 0x100   : > { %v573_v17 = vpop.f32.mrf.mxu0 }
 0x101   : > { %v326_v18 = vmax.f32 %v323_v16, 0.0 }
 0x103   : > { %591 = vmatmul.mubr.msk.f32.vlgmr.msra.gmra.mxu1 %vm342_vm2, %v326_v18 }
 0x1c3   : > { %v412_v20 = vpop.f32.mrf.mxu1 }
 0x1c4   : > { %v413_v21 = vadd.f32 %v543_v19, %v412_v20 }
 0x1c5   : > { %v592_v22 = vpop.f32.mrf.mxu1 }
 0x1c6   : > { %v416_v23 = vadd.f32 %v413_v21, %v240_v8 }
 0x1c8   : > { %v417_v24 = vsel %vm252_vm1, %v416_v23, 0.0 }
 0x1c9   : > { %418 = vadd.xlane.f32.xlu0 %v417_v24 }
 0x252   : > { %v419_v25 = vpop.xlane.xlu0 %418 }
 0x253   : > { %v420_v26 = vrot.slane %v419_v25, 4 }
 0x255   : > { %v421_v27 = vadd.f32 %v420_v26, %v419_v25 }
 0x257   : > { %v422_v28 = vrot.slane %v421_v27, 2 }
 0x259   : > { %v423_v29 = vadd.f32 %v422_v28, %v421_v27 }
 0x25b   : > { %v424_v30 = vrot.slane %v423_v29, 1 }
 0x25d   : > { %v425_v31 = vadd.f32 %v424_v30, %v423_v29 }
 0x25f   : > { %593 = vpush %v425_v31 }
 0x290   : > { %s594_s14 = spop %593 }
 0x291   : > { %s427_s16 = smul.f32 0.00390625, %s594_s14  ;;  %s681_s14 = sshll.u32 %s746_s22, 4  ;;  %s682_s14 = int_to_ptr.vmem [resolvable:$false] %s681_s14 }
 0x292   : > { %s683_s17 = scalar_lea.vmem %s682_s14, 256  ;;  %p684_p3 = scmp.lt.s32.totalorder %s464_s8, %s682_s14 }
 0x293   : > { %v428_v32 = vstv %s427_s16  ;;  %p685_p5 = scmp.lt.s32.totalorder %s683_s17, %s677_s12 }
 0x294   : > { %v429_v33 = vsub.f32 %v416_v23, %v428_v32 }
 0x295   : > { %p686_p8 = por %p685_p5, %p684_p3 }
 0x296   : > { %v430_v34 = vmul.f32 %v429_v33, %v429_v33 }
 0x297   : > { %p687_p10 = pnand %p686_p8, %p680_p1 }
 0x298   : > { %v431_v35 = vsel %vm252_vm1, %v430_v34, 0.0 }
 0x299   : > { %432 = vadd.xlane.f32.xlu0 %v431_v35 }
 0x322   : > { %v433_v36 = vpop.xlane.xlu0 %432 }
 0x323   : > { %v434_v37 = vrot.slane %v433_v36, 4 }
 0x325   : > { %v435_v38 = vadd.f32 %v434_v37, %v433_v36 }
 0x327   : > { %v436_v39 = vrot.slane %v435_v38, 2 }
 0x329   : > { %v437_v40 = vadd.f32 %v436_v39, %v435_v38 }
 0x32b   : > { %v438_v41 = vrot.slane %v437_v40, 1 }
 0x32d   : > { %v439_v42 = vadd.f32 %v438_v41, %v437_v40 }
 0x32f   : > { %595 = vpush %v439_v42 }
 0x360   : > { %s596_s25 = spop %595 }
 0x361   : > { %s441_s26 = smul.f32 0.003921569, %s596_s25 }
 0x363   : > { %s442_s15 = sadd.f32 1e-05, %s441_s26 }
 0x365   : > { %v443_v43 = vstv %s442_s15 }
 0x366   : > { %647 = vrsqrt.f32 %v443_v43 }
 0x373   : > { %v648_v44 = vpop.eup %647 }
 0x374   : > { %597 = vpush %v648_v44 }
 0x3a5   : > { %s598_s7 = spop %597 }
 0x3a6   : > { %v446_v45 = vstv %s598_s7 }
 0x3a7   : > { %v447_v46 = vmul.f32 %v446_v45, %v429_v33 }
 0x3a9   : > { %448 = vst.msk [vmem:[%s239_s29] sm:$0xff] %vm252_vm1, %v447_v46 }
 0x3aa   : > { %690 = shalt.err (!%p687_p10)
}
 0x3ab   : > { %s691_s16 = scalar_lea.hbm %s461_s11, 128  ;;  %s695_s26 = scalar_lea.hbm %s973_s5, 256 }
 0x3ac   : > { %p692_p2 = scmp.ne.s32.totalorder %s461_s11, %s691_s16  ;;  %p696_p7 = scmp.lt.s32.totalorder %s461_s11, %s973_s5 }
 0x3ad   : > { %p697_p0 = scmp.lt.s32.totalorder %s695_s26, %s691_s16 }
 0x3ae   : > { %p693_p4 = pnand %p692_p2, %p984_p12 }
 0x3af   : > { %p698_p6 = por %p697_p0, %p696_p7 }
 0x3b0   : > { %p694_p9 = pneg %p693_p4 }
 0x3b2   : > { %p699_p11 = pnand %p698_p6, %p694_p9 }
 0x3b4   : > { %702 = shalt.err (!%p699_p11)
}
 0x3b5   : > { %601 = dma.vmem_to_hbm [thread:$0]  (%p984_p12), %s464_s8, 128, %s461_s11, %s450_s23  }
 0x3b6 PF: > { %s475_s29 = sand.u32 1, %s729_s18   ;;  %p985_p13 = scmp.ne.s32.totalorder %s979_s6, 0 }
 0x3b7   : > { %p986_p1 = scmp.ge.s32.totalorder %s741_s21, 2  ;;  %s476_s7 = scalar_lea.sflag [#allocation4], %s475_s29 }
 0x3b9   : > { %p608_p3 = pnand %p986_p1, %p985_p13 }
 0x3bb   : > { %p609_p5 = pneg %p608_p3 }
 0x3bd   : > { %724 = dma.done.wait (%p609_p5), %s476_s7, 128  }
 0x3be   : > { %726 = vsyncadd (%p609_p5), %s476_s7, 4294967168  ;;  %p18_p8 = scmp.ge.s32.totalorder %s802_s24, 4   ;;  %s987_s18 = smov %s733_s19 }
 0x3bf   : > { %s988_s19 = smov %s737_s20  ;;  %s989_s20 = smov %s814_s27 }
 0x3c0   : > { %s990_s21 = smov %s802_s24  ;;  %20 = sbr.rel (!%p18_p8) target bundleno = 5 (0x5), region = 85 }
 0x3c5   :  { %481 = vsyncpa [#allocation3], 1 }
 0x3c6   :  { %483 = vsyncpa [#allocation3 + $0x1], 1 }
 0x3c7   :  { %484 = vsyncpa [#allocation4], 1 }
 0x3c8   :  { %486 = vsyncpa [#allocation4 + $0x1], 1 }

</bundles_post_ra>
